<compile_context>
chip_gen: v6e
topology: v6e:2x2x1
jax: 0.10.0
libtpu: 0.0.40
codegen_flags: <defaults>
</compile_context>

<pallas_src>
import math
import functools

import jax
import jax.numpy as jnp
from jax import lax
from jax.experimental import pallas as pl
from jax.experimental.pallas import tpu as pltpu


LANE = 128
SUBLANE = 8


def _round_up(n, m):
    return ((n + m - 1) // m) * m


def _pad_len(n):
    # Lane-dense padding: full 128 multiples once the axis is big enough
    # (realistic win_size ~105 -> 128, unmasked vst's, full MXU tiles); tiny
    # demo sizes only pad to the sublane tile to avoid a 64x (L,L) blow-up.
    return _round_up(n, LANE) if n > 64 else _round_up(n, SUBLANE)


def _pick_bb(batch, n_tokens):
    # Enough rows per projection matmul to fill the 256-row MXU M dimension,
    # capped so the unrolled per-batch softmax loop / output tile stay small.
    return max(1, min(batch, 256 // max(n_tokens, 1), 8))


# ---------------------------------------------------------------------------
# RevIN 'norm' kernel: per-(batch, feature) instance norm over the time axis.
# Tiled over B ("parallel" -> megacore shards it), rsqrt on the EUP.
# ---------------------------------------------------------------------------
def _revin_kernel(x_ref, w_ref, b_ref, o_ref):
    x = x_ref[...]                                           # (1, L, M)
    mean = jnp.mean(x, axis=1, keepdims=True)
    var = jnp.mean((x - mean) ** 2, axis=1, keepdims=True)   # unbiased=False
    xn = (x - mean) * lax.rsqrt(var + 1e-5)
    o_ref[...] = xn * w_ref[...] + b_ref[...]


def revin_norm(x, weight, bias):
    B, L, M = x.shape
    w = weight.reshape(1, 1, M)
    b = bias.reshape(1, 1, M)
    return pl.pallas_call(
        _revin_kernel,
        out_shape=jax.ShapeDtypeStruct((B, L, M), jnp.float32),
        grid=(B,),
        in_specs=[pl.BlockSpec((1, L, M), lambda i: (i, 0, 0)),
                  pl.BlockSpec((1, 1, M), lambda i: (0, 0, 0)),
                  pl.BlockSpec((1, 1, M), lambda i: (0, 0, 0))],
        out_specs=pl.BlockSpec((1, L, M), lambda i: (i, 0, 0)),
        compiler_params=pltpu.CompilerParams(
            dimension_semantics=("parallel",)),
    )(x, w, b)


# ---------------------------------------------------------------------------
# Fused per-(scale, branch) kernel, grid = (B/Bb, e_layers):
#   e == 0 : token embedding (1 bf16 MXU matmul over column-stacked circular
#            conv taps) + Mahalanobis token mask -> additive softmax bias,
#            both parked in VMEM scratch for the remaining layer steps.
#   every e: this layer's Q/K projection over all Bb batches at once, masked
#            softmax per batch, optional exact p x p patch->window upsample
#            (bf16 selection matmuls), bf16 store of the (Lp, Lp) map.
# ---------------------------------------------------------------------------
def _branch_kernel(x_ref, w3_ref, pos_ref, at_ref, wq_ref, bq_ref, wk_ref,
                   bk_ref, *rest, bb_n, n_pad, n_real, d_model, scale,
                   upsample):
    if upsample:
        r_ref, o_ref, emb_sc, bias_sc = rest
    else:
        o_ref, emb_sc, bias_sc = rest
        r_ref = None

    c3 = x_ref.shape[-1]

    # --- per-batch-block work, done once (first layer step) ----------------
    @pl.when(pl.program_id(1) == 0)
    def _():
        # circular kernel-3 Conv1d embedding as ONE bf16 matmul over the
        # column-stacked taps [x(t-1) | x(t) | x(t+1)], + positional emb.
        x3 = x_ref[...].astype(jnp.bfloat16).reshape(bb_n * n_pad, c3)
        emb = jnp.dot(x3, w3_ref[...], preferred_element_type=jnp.float32)
        emb = emb.reshape(bb_n, n_pad, d_model) + pos_ref[...][None]
        embb = emb.astype(jnp.bfloat16)
        emb_sc[...] = embb

        # Mahalanobis token mask -> additive softmax bias (computed ONCE,
        # reused by every layer).  keep_ij <=> 1/(1+dist) >= 0.5 <=> dist <= 1
        # (dist_ii ~ 0 so the diagonal always survives).  Padded key columns
        # are always dropped.
        col = lax.broadcasted_iota(jnp.int32, (n_pad, n_pad), 1)
        for bb in range(bb_n):
            y = lax.dot_general(embb[bb], at_ref[...],
                                (((1,), (0,)), ((), ())),
                                preferred_element_type=jnp.float32)
            yb = y.astype(jnp.bfloat16)                    # bf16 MXU operand
            yf = yb.astype(jnp.float32)
            gram = lax.dot_general(yb, yb, (((1,), (1,)), ((), ())),
                                   preferred_element_type=jnp.float32)
            sq = jnp.sum(yf * yf, axis=-1, keepdims=True)  # (Np, 1)
            dist = jnp.maximum(sq + sq.T - 2.0 * gram, 0.0)
            keep = (dist <= 1.0) & (col < n_real)
            bias_sc[bb] = jnp.where(keep, 0.0, -1e9).astype(jnp.float32)

    # --- this layer's Q/K projection over all Bb batches in one matmul -----
    embf = emb_sc[...].reshape(bb_n * n_pad, d_model)          # bf16
    q = jnp.dot(embf, wq_ref[0], preferred_element_type=jnp.float32) \
        + bq_ref[0]
    k = jnp.dot(embf, wk_ref[0], preferred_element_type=jnp.float32) \
        + bk_ref[0]
    q = q.astype(jnp.bfloat16).reshape(bb_n, n_pad, d_model)
    k = k.astype(jnp.bfloat16).reshape(bb_n, n_pad, d_model)

    for bb in range(bb_n):
        s = lax.dot_general(q[bb], k[bb], (((1,), (1,)), ((), ())),
                            preferred_element_type=jnp.float32) * scale
        s = s + bias_sc[bb]
        s = s - jnp.max(s, axis=-1, keepdims=True)
        ex = jnp.exp(s)                                        # f32 on EUP
        attn = ex * pl.reciprocal(jnp.sum(ex, axis=-1, keepdims=True),
                                  approx=True)
        if upsample:
            # exact p x p patch->window duplication as bf16 selection matmuls
            # R.S.R^T.  Every output element is a single-term sum, so this is
            # lossless beyond the bf16 output store itself.
            ab = attn.astype(jnp.bfloat16)
            r = r_ref[...]                                     # (Lp, Np) bf16
            tmp = lax.dot_general(ab, r, (((1,), (1,)), ((), ())),
                                  preferred_element_type=jnp.float32)
            attn = jnp.dot(r, tmp.astype(jnp.bfloat16),
                           preferred_element_type=jnp.float32)  # (Lp, Lp)
        o_ref[bb, 0] = attn.astype(o_ref.dtype)                 # bf16 store


def fused_branch_attention(x_taps, w3, pos, a_t, wq, bq, wk, bk, *, scale,
                           e_layers, d_model, n_real_tokens, out_len,
                           out_pad, patch, bb_n):
    Bp, Np, C3 = x_taps.shape
    E, D, Lp = e_layers, d_model, out_pad
    upsample = patch > 1
    if not upsample:
        assert Np == Lp

    args = [x_taps, w3, pos, a_t, wq, bq, wk, bk]
    in_specs = [
        pl.BlockSpec((bb_n, Np, C3), lambda b, e: (b, 0, 0)),
        pl.BlockSpec((C3, D), lambda b, e: (0, 0)),
        pl.BlockSpec((Np, D), lambda b, e: (0, 0)),
        pl.BlockSpec((D, D), lambda b, e: (0, 0)),
        pl.BlockSpec((1, D, D), lambda b, e: (e, 0, 0)),     # per-layer Wq
        pl.BlockSpec((1, 1, D), lambda b, e: (e, 0, 0)),
        pl.BlockSpec((1, D, D), lambda b, e: (e, 0, 0)),     # per-layer Wk
        pl.BlockSpec((1, 1, D), lambda b, e: (e, 0, 0)),
    ]
    if upsample:
        rows = jnp.arange(Lp)[:, None]
        cols = jnp.arange(Np)[None, :]
        r = (((rows // patch) == cols) & (rows < out_len)).astype(jnp.bfloat16)
        args.append(r)
        in_specs.append(pl.BlockSpec((Lp, Np), lambda b, e: (0, 0)))

    kern = functools.partial(_branch_kernel, bb_n=bb_n, n_pad=Np,
                             n_real=n_real_tokens, d_model=D, scale=scale,
                             upsample=upsample)
    return pl.pallas_call(
        kern,
        out_shape=jax.ShapeDtypeStruct((Bp, E, Lp, Lp), jnp.bfloat16),
        grid=(Bp // bb_n, E),
        in_specs=in_specs,
        out_specs=pl.BlockSpec((bb_n, 1, Lp, Lp), lambda b, e: (b, e, 0, 0)),
        scratch_shapes=[pltpu.VMEM((bb_n, Np, D), jnp.bfloat16),   # embeddings
                        pltpu.VMEM((bb_n, Np, Np), jnp.float32)],  # mask bias
        compiler_params=pltpu.CompilerParams(
            dimension_semantics=("parallel", "arbitrary"),
            vmem_limit_bytes=56 * 1024 * 1024),
    )(*args)


# ---------------------------------------------------------------------------
# Glue (plain JAX): positional table, tap stacking, patching, padding.
# ---------------------------------------------------------------------------
def sinusoidal_pos_emb(n, d):
    pos = jnp.arange(n, dtype=jnp.float32)[:, None]
    i = jnp.arange(0, d, 2, dtype=jnp.float32)[None, :]
    div = jnp.exp(-(i / d) * math.log(10000.0))
    pe = jnp.zeros((n, d), jnp.float32)
    pe = pe.at[:, 0::2].set(jnp.sin(pos * div))
    pe = pe.at[:, 1::2].set(jnp.cos(pos * div))
    return pe


def _stack_circular_taps(x):
    # [x(t-1) | x(t) | x(t+1)] along features (circular along the token axis).
    return jnp.concatenate(
        [jnp.roll(x, 1, axis=1), x, jnp.roll(x, -1, axis=1)], axis=-1)


def _pad_axis(x, axis, target):
    pad = target - x.shape[axis]
    if pad == 0:
        return x
    widths = [(0, 0)] * x.ndim
    widths[axis] = (0, pad)
    return jnp.pad(x, widths)


def febdetector_forward(x, params, patch_sizes, d_model, n_heads, e_layers):
    B, L, M = x.shape
    scale = 1.0 / math.sqrt(d_model // n_heads)
    xn = revin_norm(x, params["revin_w"], params["revin_b"])

    Lp = _pad_len(L)

    # Per-layer Q/K weights stacked along a leading layer axis -> the `e` grid
    # axis selects them (no unrolled layer loop, no wide-matmul slicing).
    wq = jnp.stack([w for (w, _, _, _) in params["layers"]]).astype(jnp.bfloat16)
    bq = jnp.stack([b for (_, b, _, _) in params["layers"]])
    wk = jnp.stack([w for (_, _, w, _) in params["layers"]]).astype(jnp.bfloat16)
    bk = jnp.stack([b for (_, _, _, b) in params["layers"]])
    a1_t = params["A1"].T.astype(jnp.bfloat16)
    a2_t = params["A2"].T.astype(jnp.bfloat16)

    # Global (patch-num) branch tokens: circular taps on the real tokens,
    # then pad the token axis.
    bb_g = _pick_bb(B, Lp)
    xg3 = _pad_axis(_stack_circular_taps(xn), 1, Lp)             # (B, Lp, 3M)
    xg3 = _pad_axis(xg3, 0, _round_up(B, bb_g))
    pos_g = sinusoidal_pos_emb(Lp, d_model)

    series_list, prior_list = [], []
    for pi, p in enumerate(patch_sizes):
        assert L % p == 0, "win_size must be divisible by patch size"
        N = L // p
        Np = _pad_len(N)
        bb_s = _pick_bb(B, Np)

        # rearrange: b l m -> b m l -> b m n p -> b n m p -> b n (m p)
        xp = jnp.transpose(xn, (0, 2, 1)).reshape(B, M, N, p)
        xp = jnp.transpose(xp, (0, 2, 1, 3)).reshape(B, N, M * p)
        xp3 = _pad_axis(_stack_circular_taps(xp), 1, Np)         # (B, Np, 3Mp)
        xp3 = _pad_axis(xp3, 0, _round_up(B, bb_s))
        pos_p = sinusoidal_pos_emb(Np, d_model)

        series_stack = fused_branch_attention(
            xp3, params["emb_ps_w3"][pi], pos_p, a1_t, wq, bq, wk, bk,
            scale=scale, e_layers=e_layers, d_model=d_model,
            n_real_tokens=N, out_len=L, out_pad=Lp, patch=p, bb_n=bb_s)
        prior_stack = fused_branch_attention(
            xg3, params["emb_pn_w3"][pi], pos_g, a2_t, wq, bq, wk, bk,
            scale=scale, e_layers=e_layers, d_model=d_model,
            n_real_tokens=L, out_len=L, out_pad=Lp, patch=1, bb_n=bb_g)

        series_stack = series_stack[:B, :, :L, :L]               # drop padding
        prior_stack = prior_stack[:B, :, :L, :L]

        for e in range(e_layers):
            series_list.append(series_stack[:, e][:, None])      # (B, 1, L, L)
            prior_list.append(prior_stack[:, e][:, None])
    return series_list, prior_list


# ---------------------------------------------------------------------------
if __name__ == "__main__":
    B, L, M = 2, 16, 4            # batch, win_size, channel (enc_in)
    d_model, e_layers, n_heads = 32, 2, 1
    patch_sizes = [2, 4]

    key = jax.random.PRNGKey(0)
    keys = iter(jax.random.split(key, 32))

    def init(shape, s=0.02):
        return jax.random.normal(next(keys), shape, jnp.float32) * s

    params = {
        "revin_w": jnp.ones((1, M), jnp.float32),
        "revin_b": jnp.zeros((1, M), jnp.float32),
        # TokenEmbedding conv weights: taps (t-1, t, t+1) row-stacked -> (3C, D)
        "emb_ps_w3": [init((3, p * M, d_model)).reshape(3 * p * M, d_model)
                      .astype(jnp.bfloat16) for p in patch_sizes],
        "emb_pn_w3": [init((3, M, d_model)).reshape(3 * M, d_model)
                      .astype(jnp.bfloat16) for _ in patch_sizes],
        "A1": init((d_model, d_model), 0.1),
        "A2": init((d_model, d_model), 0.1),
        "layers": [
            (init((d_model, d_model)), jnp.zeros((1, d_model), jnp.float32),
             init((d_model, d_model)), jnp.zeros((1, d_model), jnp.float32))
            for _ in range(e_layers)
        ],
    }

    x = jax.random.normal(next(keys), (B, L, M), jnp.float32)

    series_list, prior_list = febdetector_forward(x, params, patch_sizes,
                                                  d_model, n_heads, e_layers)
    jax.block_until_ready((series_list, prior_list))

    assert len(series_list) == len(patch_sizes) * e_layers
    assert len(prior_list) == len(patch_sizes) * e_layers
    for s, p in zip(series_list, prior_list):
        assert s.shape == (B, n_heads, L, L), s.shape
        assert p.shape == (B, n_heads, L, L), p.shape
        assert s.dtype == jnp.bfloat16 and p.dtype == jnp.bfloat16
        assert bool(jnp.all(jnp.isfinite(s.astype(jnp.float32))))
        assert bool(jnp.all(jnp.isfinite(p.astype(jnp.float32))))

    print("KERNEL_OK")
</pallas_src>

<mosaic_0001>
module attributes {stable_mosaic.version = 11 : i64} {
  func.func @_revin_kernel(%arg0: i32, %arg1: memref<1x16x4xf32, #tpu.memory_space<vmem>>, %arg2: memref<1x1x4xf32, #tpu.memory_space<vmem>>, %arg3: memref<1x1x4xf32, #tpu.memory_space<vmem>>, %arg4: memref<1x16x4xf32, #tpu.memory_space<vmem>>) attributes {dimension_semantics = [#tpu.dimension_semantics<parallel>], iteration_bounds = array<i64: 2>, scalar_prefetch = 0 : i64, scratch_operands = 0 : i64, tpu.core_type = #tpu.core_type<tc>, window_params = [{transform_indices = @transform_0, window_bounds = array<i64: 1, 16, 4>}, {pipeline_mode = #tpu.pipeline_mode<synchronous>, transform_indices = @transform_1, window_bounds = array<i64: 1, 1, 4>}, {pipeline_mode = #tpu.pipeline_mode<synchronous>, transform_indices = @transform_2, window_bounds = array<i64: 1, 1, 4>}, {transform_indices = @transform_3, window_bounds = array<i64: 1, 16, 4>}]} {
    %c0 = arith.constant 0 : index
    %c0_0 = arith.constant 0 : index
    %c0_1 = arith.constant 0 : index
    %0 = vector.load %arg1[%c0, %c0_0, %c0_1] : memref<1x16x4xf32, #tpu.memory_space<vmem>>, vector<1x16x4xf32>
    %cst = arith.constant dense<0.000000e+00> : vector<1x4xf32>
    %1 = vector.multi_reduction <add>, %0, %cst [1] : vector<1x16x4xf32> to vector<1x4xf32>
    %2 = vector.shape_cast %1 : vector<1x4xf32> to vector<1x1x4xf32>
    %cst_2 = arith.constant 1.600000e+01 : f32
    %3 = vector.broadcast %cst_2 : f32 to vector<1x1x4xf32>
    %4 = arith.divf %2, %3 : vector<1x1x4xf32>
    %5 = vector.broadcast %4 : vector<1x1x4xf32> to vector<1x16x4xf32>
    %6 = arith.subf %0, %5 : vector<1x16x4xf32>
    %7 = arith.mulf %6, %6 : vector<1x16x4xf32>
    %cst_3 = arith.constant dense<0.000000e+00> : vector<1x4xf32>
    %8 = vector.multi_reduction <add>, %7, %cst_3 [1] : vector<1x16x4xf32> to vector<1x4xf32>
    %9 = vector.shape_cast %8 : vector<1x4xf32> to vector<1x1x4xf32>
    %cst_4 = arith.constant 1.600000e+01 : f32
    %10 = vector.broadcast %cst_4 : f32 to vector<1x1x4xf32>
    %11 = arith.divf %9, %10 : vector<1x1x4xf32>
    %12 = vector.broadcast %4 : vector<1x1x4xf32> to vector<1x16x4xf32>
    %13 = arith.subf %0, %12 : vector<1x16x4xf32>
    %cst_5 = arith.constant 9.99999974E-6 : f32
    %14 = vector.broadcast %cst_5 : f32 to vector<1x1x4xf32>
    %15 = arith.addf %11, %14 : vector<1x1x4xf32>
    %16 = math.rsqrt %15 : vector<1x1x4xf32>
    %17 = vector.broadcast %16 : vector<1x1x4xf32> to vector<1x16x4xf32>
    %18 = arith.mulf %13, %17 : vector<1x16x4xf32>
    %c0_6 = arith.constant 0 : index
    %c0_7 = arith.constant 0 : index
    %c0_8 = arith.constant 0 : index
    %19 = vector.load %arg2[%c0_6, %c0_7, %c0_8] : memref<1x1x4xf32, #tpu.memory_space<vmem>>, vector<1x1x4xf32>
    %20 = vector.broadcast %19 : vector<1x1x4xf32> to vector<1x16x4xf32>
    %21 = arith.mulf %18, %20 : vector<1x16x4xf32>
    %c0_9 = arith.constant 0 : index
    %c0_10 = arith.constant 0 : index
    %c0_11 = arith.constant 0 : index
    %22 = vector.load %arg3[%c0_9, %c0_10, %c0_11] : memref<1x1x4xf32, #tpu.memory_space<vmem>>, vector<1x1x4xf32>
    %23 = vector.broadcast %22 : vector<1x1x4xf32> to vector<1x16x4xf32>
    %24 = arith.addf %21, %23 : vector<1x16x4xf32>
    %c0_12 = arith.constant 0 : index
    %c0_13 = arith.constant 0 : index
    %c0_14 = arith.constant 0 : index
    %25 = vector.load %arg4[%c0_12, %c0_13, %c0_14] : memref<1x16x4xf32, #tpu.memory_space<vmem>>, vector<1x16x4xf32>
    tpu.vector_store %arg4[%c0_12, %c0_13, %c0_14], %24 {strides = array<i32>} : memref<1x16x4xf32, #tpu.memory_space<vmem>>, vector<1x16x4xf32>,
    return
  }
  func.func @transform_0(%arg0: i32) -> (i32, i32, i32) {
    %c0_i32 = arith.constant 0 : i32
    %c0_i32_0 = arith.constant 0 : i32
    %c0_i32_1 = arith.constant 0 : i32
    return %arg0, %c0_i32, %c0_i32_0 : i32, i32, i32
  }
  func.func @transform_1(%arg0: i32) -> (i32, i32, i32) {
    %c0_i32 = arith.constant 0 : i32
    %c0_i32_0 = arith.constant 0 : i32
    %c0_i32_1 = arith.constant 0 : i32
    %c0_i32_2 = arith.constant 0 : i32
    return %c0_i32, %c0_i32_0, %c0_i32_1 : i32, i32, i32
  }
  func.func @transform_2(%arg0: i32) -> (i32, i32, i32) {
    %c0_i32 = arith.constant 0 : i32
    %c0_i32_0 = arith.constant 0 : i32
    %c0_i32_1 = arith.constant 0 : i32
    %c0_i32_2 = arith.constant 0 : i32
    return %c0_i32, %c0_i32_0, %c0_i32_1 : i32, i32, i32
  }
  func.func @transform_3(%arg0: i32) -> (i32, i32, i32) {
    %c0_i32 = arith.constant 0 : i32
    %c0_i32_0 = arith.constant 0 : i32
    %c0_i32_1 = arith.constant 0 : i32
    return %arg0, %c0_i32, %c0_i32_0 : i32, i32, i32
  }
}

</mosaic_0001>

<bundles_post_ra>
// kernel: tpu_custom_call.1
= control target key start
LH: loop header
LB: loop body
LE: loop exit
PB: predicated region body
PF: predicated region fallthrough
CT: control target
= control target key end

     0   :  { %s331_s12 = smov 0   ;;  %s367_s0 = inlined_call_operand.vmem [shape: f32[2,16,4], index: 0, kind: input, shape index: {}]   ;;  %s368_s1 = inlined_call_operand.vmem [shape: f32[1,1,4], index: 1, kind: input, shape index: {}]   ;;  %s369_s2 = inlined_call_operand.vmem [shape: f32[1,1,4], index: 2, kind: input, shape index: {}]   ;;  %s370_s3 = inlined_call_operand.vmem [shape: f32[2,16,4], index: 3, kind: output, shape index: {}]  }
   0x1 LB: > { %s278_s13 = sadd.s32 4294967295, %s309_s12   ;;  %p282_p0 = scmp.ge.s32.totalorder %s309_s12, 1  ;;  %s309_s12 = sphi %s331_s12, %s13_s12  }
   0x2   : > { %p137_p1 = scmp.lt.s32.totalorder %s309_s12, 3 }
   0x4   : > { %p138_p2 = pnand %p282_p0, %p137_p1 }
   0x5   : > { %p161_p3 = scmp.lt.s32.totalorder (!%p138_p2), %s278_s13, 1 }
   0x6   : > { %141 = sbr.rel (%p138_p2) target bundleno = 76 (0x4c), region = 32 }
   0xb   : > { %s372_s13 = smov (!%p161_p3, %s278_s13), 1  ;;  %vm173_vm0 = vcmask 31744   ;;  %v287_v28 = vld [vmem:[%s368_s1] ss:$0 sm:$0xff] }
   0xc   : > { %s291_s14 = sshll.u32 %s372_s13, 4  ;;  %v288_v31 = vld [vmem:[%s369_s2] ss:$0 sm:$0xff] }
   0xd   : > { %s165_s17 = scalar_lea.vmem %s367_s0, %s291_s14  ;;  %s170_s24 = scalar_lea.vmem %s370_s3, %s291_s14 }
   0xe   : > { %v171_v0 = vld [vmem:[%s165_s17] sm:$0xff]  ;;  %v172_v1 = vld [vmem:[%s165_s17 + $0x8] sm:$0xff] }
   0xf   : > { %v174_v2 = vsel %vm173_vm0, %v171_v0, 0.0  ;;  %v175_v3 = vsel %vm173_vm0, %v172_v1, 0.0 }
  0x10   : > { %v176_v4 = vadd.f32 %v175_v3, %v174_v2 }
  0x12   : > { %v177_v5 = vrot.slane %v176_v4, 4 }
  0x14   : > { %v178_v6 = vadd.f32 %v177_v5, %v176_v4 }
  0x16   : > { %v179_v7 = vrot.slane %v178_v6, 2 }
  0x18   : > { %v180_v8 = vadd.f32 %v179_v7, %v178_v6 }
  0x1a   : > { %v181_v9 = vrot.slane %v180_v8, 1 }
  0x1c   : > { %v182_v10 = vadd.f32 %v181_v9, %v180_v8 }
  0x1e   : > { %v184_v11 = vmul.f32 0.0625, %v182_v10 }
  0x20   : > { %v185_v12 = vsub.f32 %v171_v0, %v184_v11  ;;  %v186_v13 = vsub.f32 %v172_v1, %v184_v11 }
  0x22   : > { %v187_v14 = vmul.f32 %v185_v12, %v185_v12  ;;  %v188_v15 = vmul.f32 %v186_v13, %v186_v13 }
  0x24   : > { %v189_v16 = vsel %vm173_vm0, %v187_v14, 0.0  ;;  %v190_v17 = vsel %vm173_vm0, %v188_v15, 0.0 }
  0x25   : > { %v191_v18 = vadd.f32 %v190_v17, %v189_v16 }
  0x27   : > { %v192_v19 = vrot.slane %v191_v18, 4 }
  0x29   : > { %v193_v20 = vadd.f32 %v192_v19, %v191_v18 }
  0x2b   : > { %v194_v21 = vrot.slane %v193_v20, 2 }
  0x2d   : > { %v195_v22 = vadd.f32 %v194_v21, %v193_v20 }
  0x2f   : > { %v196_v23 = vrot.slane %v195_v22, 1 }
  0x31   : > { %v197_v24 = vadd.f32 %v196_v23, %v195_v22 }
  0x33   : > { %v198_v25 = vmul.f32 0.0625, %v197_v24 }
  0x35   : > { %v199_v26 = vadd.f32 1e-05, %v198_v25 }
  0x37   : > { %301 = vrsqrt.f32 %v199_v26 }
  0x44   : > { %v302_v27 = vpop.eup %301 }
  0x45   : > { %v201_v29 = vmul.f32 %v302_v27, %v185_v12  ;;  %v202_v30 = vmul.f32 %v302_v27, %v186_v13 }
  0x47   : > { %v210_v32 = vmul.f32 %v287_v28, %v201_v29  ;;  %v211_v33 = vmul.f32 %v287_v28, %v202_v30 }
  0x49   : > { %v219_v34 = vadd.f32 %v288_v31, %v210_v32  ;;  %v220_v35 = vadd.f32 %v288_v31, %v211_v33 }
  0x4b   : > { %221 = vst.msk [vmem:[%s170_s24] sm:$0xff] %vm173_vm0, %v219_v34  ;;  %222 = vst.msk [vmem:[%s170_s24 + $0x8] sm:$0xff] %vm173_vm0, %v220_v35 }
  0x4c PF: > { %s13_s12 = sadd.s32 1, %s309_s12  }
  0x4d   : > { %p10_p4 = scmp.ge.s32.totalorder %s13_s12, 4  }
  0x4f   :  { %12 = sbr.rel (!%p10_p4) target bundleno = 1 (0x1), region = 62 }

</bundles_post_ra>
